<compile_context>
chip_gen: v6e
topology: v6e:2x2x1
jax: 0.10.0
libtpu: 0.0.40
codegen_flags: <defaults>
</compile_context>

<pallas_src>
import jax
import jax.numpy as jnp
from jax.experimental import pallas as pl
from jax.experimental.pallas import tpu as pltpu


def _round_up(x, m):
    return ((x + m - 1) // m) * m


def _bias_offsets(h, g):
    """Lane-aligned (multiple of 128) offsets of the packed bias segments."""
    o1 = 0
    o2 = _round_up(h, 128)
    total = o2 + _round_up(g, 128)
    return (o1, o2), total


def _choose_vflat_tiling(vflat, tn_cap=8192):
    """Pick the V^3 tile width and the padded V^3 extent (multiple of tile)."""
    vpad = _round_up(vflat, 128)
    tn = min(vpad, tn_cap)
    vpad = _round_up(vpad, tn)
    return tn, vpad


def _text2shape_kernel(pool_ref, w_eh_ref, w_hg_ref, w4_ref,
                       b_small_ref, b4_ref, out_ref):
    h_dim = w_eh_ref.shape[1]
    g_dim = w_hg_ref.shape[1]
    (o1, o2), _ = _bias_offsets(h_dim, g_dim)

    # Packed small biases (f32), static lane-aligned slices.
    b1 = b_small_ref[:, o1:o1 + h_dim]
    b_hg = b_small_ref[:, o2:o2 + g_dim]

    def mxu(a, w_ref):
        # bf16 MXU operands, f32 accumulation.
        return jnp.dot(a, w_ref[...], preferred_element_type=jnp.float32)

    # Folded encoder: relu(pool @ (emb @ w1) + b1).  pool arrives as bf16.
    h = jnp.maximum(mxu(pool_ref[...], w_eh_ref) + b1, 0.0)          # (TB, H)
    # Folded latent + generator hidden: relu(h @ (w2 @ w3) + (b2 @ w3 + b3)).
    g = jnp.maximum(mxu(h.astype(jnp.bfloat16), w_hg_ref) + b_hg, 0.0)  # (TB, G)
    # This V^3 tile of the voxel logits.
    logits = mxu(g.astype(jnp.bfloat16), w4_ref) + b4_ref[...]       # (TB, TN)
    # sigmoid = 1 / (1 + exp(-x)): exp on the EUP slot, approx reciprocal
    # avoids a multi-pass VPU divide on the largest elementwise tensor.
    out_ref[...] = pl.reciprocal(1.0 + jnp.exp(-logits), approx=True)


def simple_text2shape(input_text, params, *, vox=8):
    """input_text: int32 token ids of shape (B, S) -> voxels (B, 1, V, V, V)."""
    w_eh = params["w_eh"]                  # (VOCAB, H)   bf16
    w_hg = params["w_hg"]                  # (H, G)       bf16
    w4 = params["w4"]                      # (G, Vpad)    bf16
    b_small = params["b_small"]            # (1, packed)  f32
    b4 = params["b4"]                      # (1, Vpad)    f32

    vocab = w_eh.shape[0]
    g_dim = w_hg.shape[1]
    vflat = vox ** 3
    tn, vflat_pad = _choose_vflat_tiling(vflat)
    assert w4.shape[1] == vflat_pad and b4.shape[1] == vflat_pad

    B, S = input_text.shape
    # Mean-pool over the sequence expressed as a bf16 one-hot pooling matrix
    # (B, VOCAB); the actual (pool @ emb@w1) gather runs inside the kernel.
    onehot = (input_text[:, :, None] ==
              jnp.arange(vocab, dtype=input_text.dtype)[None, None, :])
    pool = (onehot.astype(jnp.float32).sum(axis=1) * (1.0 / S)
            ).astype(jnp.bfloat16)                                   # (B, VOCAB)

    # Pad batch to a full block (>=8 rows, <=256) so MXU rows and the
    # (TB, TN) output stores are unmasked; padded rows compute garbage that
    # is sliced off below and never read.
    block_b = min(256, _round_up(B, 8))
    b_pad = _round_up(B, block_b)
    pool = jnp.pad(pool, ((0, b_pad - B), (0, 0)))

    grid = (b_pad // block_b, vflat_pad // tn)
    vmem_full = pl.BlockSpec(memory_space=pltpu.MemorySpace.VMEM)

    # VMEM budget: residents + double-buffered streamed tiles + temps.
    est = (
        w_eh.size * 2 + w_hg.size * 2 + b_small.size * 4             # resident
        + 2 * (block_b * vocab * 2)                                   # pool bufs
        + 2 * (g_dim * tn * 2) + 2 * (tn * 4)                         # w4/b4 tiles
        + 4 * (block_b * tn * 4)                                      # out bufs + temps
        + (2 << 20)
    )
    vmem_limit = min(48 << 20, max(32 << 20, int(est)))

    out_flat = pl.pallas_call(
        _text2shape_kernel,
        out_shape=jax.ShapeDtypeStruct((b_pad, vflat_pad), jnp.float32),
        grid=grid,
        in_specs=[
            pl.BlockSpec((block_b, vocab), lambda i, j: (i, 0)),  # pooling matrix
            vmem_full,                                            # W_eh (resident)
            vmem_full,                                            # W_hg (resident)
            pl.BlockSpec((g_dim, tn), lambda i, j: (0, j)),       # w4 V^3 tile
            vmem_full,                                            # packed small biases
            pl.BlockSpec((1, tn), lambda i, j: (0, j)),           # b4 V^3 tile
        ],
        out_specs=pl.BlockSpec((block_b, tn), lambda i, j: (i, j)),
        compiler_params=pltpu.CompilerParams(
            dimension_semantics=("parallel", "parallel"),  # batch x V^3 tiles
            vmem_limit_bytes=vmem_limit),
    )(pool, w_eh, w_hg, w4, b_small, b4)

    # (B, V^3) -> (B, 1, V, V, V) voxel grid, NCDHW.
    return out_flat[:B, :vflat].reshape(B, 1, vox, vox, vox)


def init_params(key, *, vocab=32, d=32, h=64, latent=32, g=64, vox=8):
    """Raw per-layer parameters (what the PyTorch module would hold)."""
    ks = jax.random.split(key, 9)
    vflat = vox ** 3
    scale = 0.1
    rnd = lambda k, shape: scale * jax.random.normal(k, shape, jnp.float32)
    return {
        "emb": rnd(ks[0], (vocab, d)),
        "w1": rnd(ks[1], (d, h)), "b1": rnd(ks[2], (h,)),
        "w2": rnd(ks[3], (h, latent)), "b2": rnd(ks[4], (latent,)),
        "w3": rnd(ks[5], (latent, g)), "b3": rnd(ks[6], (g,)),
        "w4": rnd(ks[7], (g, vflat)), "b4": rnd(ks[8], (vflat,)),
    }


def fold_params(raw, *, vox=8):
    """Parameter-prep-time folding of the activation-free linear pairs (f32
    math), then bf16 cast of the MXU operands and V^3 padding to the kernel's
    tile size.  Biases stay f32 for the f32 epilogue."""
    vflat = vox ** 3
    _, vflat_pad = _choose_vflat_tiling(vflat)

    w_eh = raw["emb"] @ raw["w1"]                      # (VOCAB, H)
    w_hg = raw["w2"] @ raw["w3"]                       # (H, G)
    b_hg = raw["b2"] @ raw["w3"] + raw["b3"]           # (G,)

    h = w_eh.shape[1]
    g = w_hg.shape[1]
    (o1, o2), total = _bias_offsets(h, g)
    b_small = jnp.zeros((1, total), jnp.float32)
    b_small = b_small.at[0, o1:o1 + h].set(raw["b1"])
    b_small = b_small.at[0, o2:o2 + g].set(b_hg)

    w4 = jnp.pad(raw["w4"], ((0, 0), (0, vflat_pad - vflat)))
    b4 = jnp.pad(raw["b4"], (0, vflat_pad - vflat))[None, :]

    return {
        "w_eh": w_eh.astype(jnp.bfloat16),
        "w_hg": w_hg.astype(jnp.bfloat16),
        "w4": w4.astype(jnp.bfloat16),
        "b_small": b_small,
        "b4": b4,
    }


if __name__ == "__main__":
    key = jax.random.PRNGKey(0)
    pkey, tkey = jax.random.split(key)

    B, S, VOCAB, VOX = 2, 8, 32, 8
    raw = init_params(pkey, vocab=VOCAB, vox=VOX)
    params = fold_params(raw, vox=VOX)
    input_text = jax.random.randint(tkey, (B, S), 0, VOCAB, dtype=jnp.int32)

    fwd = jax.jit(simple_text2shape, static_argnames="vox")
    out = fwd(input_text, params, vox=VOX)
    out = jax.block_until_ready(out)

    assert out.shape == (B, 1, VOX, VOX, VOX), out.shape
    assert out.dtype == jnp.float32
    assert bool(jnp.all(jnp.isfinite(out)))
    # sigmoid output range sanity check (approx reciprocal may overshoot by ulps)
    assert bool(jnp.all((out > -1e-3) & (out < 1.0 + 1e-3)))

    # Pure-JAX reference with the SAME folded bf16 weights / f32 epilogue; the
    # only numeric difference vs the kernel is exact sigmoid vs EUP-approx.
    vflat = VOX ** 3
    w_eh, w_hg, w4, b4 = params["w_eh"], params["w_hg"], params["w4"], params["b4"]
    (o1, o2), _ = _bias_offsets(w_eh.shape[1], w_hg.shape[1])
    bsm = params["b_small"][0]
    b1 = bsm[o1:o1 + w_eh.shape[1]]
    b_hg = bsm[o2:o2 + w_hg.shape[1]]

    onehot = (input_text[:, :, None] ==
              jnp.arange(VOCAB, dtype=jnp.int32)[None, None, :])
    pool = (onehot.astype(jnp.float32).sum(axis=1) * (1.0 / S)
            ).astype(jnp.bfloat16)
    dot = lambda a, w: jnp.dot(a, w, preferred_element_type=jnp.float32)
    h = jnp.maximum(dot(pool, w_eh) + b1, 0.0)
    g = jnp.maximum(dot(h.astype(jnp.bfloat16), w_hg) + b_hg, 0.0)
    logits = dot(g.astype(jnp.bfloat16), w4[:, :vflat]) + b4[0, :vflat]
    ref = jax.nn.sigmoid(logits).reshape(B, 1, VOX, VOX, VOX)
    assert bool(jnp.max(jnp.abs(out - ref)) < 5e-3)

    print("KERNEL_OK")
</pallas_src>

<mosaic_0001>
module attributes {stable_mosaic.version = 11 : i64} {
  func.func @_text2shape_kernel(%arg0: i32, %arg1: i32, %arg2: memref<8x32xbf16, #tpu.memory_space<vmem>>, %arg3: memref<32x64xbf16, #tpu.memory_space<vmem>>, %arg4: memref<64x64xbf16, #tpu.memory_space<vmem>>, %arg5: memref<64x512xbf16, #tpu.memory_space<vmem>>, %arg6: memref<1x256xf32, #tpu.memory_space<vmem>>, %arg7: memref<1x512xf32, #tpu.memory_space<vmem>>, %arg8: memref<8x512xf32, #tpu.memory_space<vmem>>) attributes {dimension_semantics = [#tpu.dimension_semantics<parallel>, #tpu.dimension_semantics<parallel>], iteration_bounds = array<i64: 1, 1>, scalar_prefetch = 0 : i64, scratch_operands = 0 : i64, tpu.core_type = #tpu.core_type<tc>, window_params = [{transform_indices = @transform_0, window_bounds = array<i64: 8, 32>}, {pipeline_mode = #tpu.pipeline_mode<synchronous>, transform_indices = @transform_1, window_bounds = array<i64: 32, 64>}, {pipeline_mode = #tpu.pipeline_mode<synchronous>, transform_indices = @transform_2, window_bounds = array<i64: 64, 64>}, {transform_indices = @transform_3, window_bounds = array<i64: 64, 512>}, {pipeline_mode = #tpu.pipeline_mode<synchronous>, transform_indices = @transform_4, window_bounds = array<i64: 1, 256>}, {transform_indices = @transform_5, window_bounds = array<i64: 1, 512>}, {transform_indices = @transform_6, window_bounds = array<i64: 8, 512>}]} {
    %c0 = arith.constant 0 : index
    %c0_0 = arith.constant 0 : index
    %0 = vector.load %arg6[%c0, %c0_0] : memref<1x256xf32, #tpu.memory_space<vmem>>, vector<1x64xf32>
    %c0_1 = arith.constant 0 : index
    %c128 = arith.constant 128 : index
    %1 = vector.load %arg6[%c0_1, %c128] : memref<1x256xf32, #tpu.memory_space<vmem>>, vector<1x64xf32>
    %c0_2 = arith.constant 0 : index
    %c0_3 = arith.constant 0 : index
    %2 = vector.load %arg2[%c0_2, %c0_3] : memref<8x32xbf16, #tpu.memory_space<vmem>>, vector<8x32xbf16>
    %c0_4 = arith.constant 0 : index
    %c0_5 = arith.constant 0 : index
    %3 = vector.load %arg3[%c0_4, %c0_5] : memref<32x64xbf16, #tpu.memory_space<vmem>>, vector<32x64xbf16>
    %cst = arith.constant dense<0.000000e+00> : vector<8x64xf32>
    %4 = tpu.matmul %2, %3, %cst {dimension_numbers = #tpu.dot_dimension_numbers<[1], [0], [0], [1], [0, 0, 1, 1], [], []>} : vector<8x32xbf16>, vector<32x64xbf16>, vector<8x64xf32> -> vector<8x64xf32>
    %5 = vector.broadcast %0 : vector<1x64xf32> to vector<8x64xf32>
    %6 = arith.addf %4, %5 : vector<8x64xf32>
    %cst_6 = arith.constant 0.000000e+00 : f32
    %7 = vector.broadcast %cst_6 : f32 to vector<8x64xf32>
    %8 = arith.maximumf %6, %7 : vector<8x64xf32>
    %9 = arith.truncf %8 : vector<8x64xf32> to vector<8x64xbf16>
    %c0_7 = arith.constant 0 : index
    %c0_8 = arith.constant 0 : index
    %10 = vector.load %arg4[%c0_7, %c0_8] : memref<64x64xbf16, #tpu.memory_space<vmem>>, vector<64x64xbf16>
    %cst_9 = arith.constant dense<0.000000e+00> : vector<8x64xf32>
    %11 = tpu.matmul %9, %10, %cst_9 {dimension_numbers = #tpu.dot_dimension_numbers<[1], [0], [0], [1], [0, 0, 1, 1], [], []>} : vector<8x64xbf16>, vector<64x64xbf16>, vector<8x64xf32> -> vector<8x64xf32>
    %12 = vector.broadcast %1 : vector<1x64xf32> to vector<8x64xf32>
    %13 = arith.addf %11, %12 : vector<8x64xf32>
    %cst_10 = arith.constant 0.000000e+00 : f32
    %14 = vector.broadcast %cst_10 : f32 to vector<8x64xf32>
    %15 = arith.maximumf %13, %14 : vector<8x64xf32>
    %16 = arith.truncf %15 : vector<8x64xf32> to vector<8x64xbf16>
    %c0_11 = arith.constant 0 : index
    %c0_12 = arith.constant 0 : index
    %17 = vector.load %arg5[%c0_11, %c0_12] : memref<64x512xbf16, #tpu.memory_space<vmem>>, vector<64x512xbf16>
    %cst_13 = arith.constant dense<0.000000e+00> : vector<8x512xf32>
    %18 = tpu.matmul %16, %17, %cst_13 {dimension_numbers = #tpu.dot_dimension_numbers<[1], [0], [0], [1], [0, 0, 1, 1], [], []>} : vector<8x64xbf16>, vector<64x512xbf16>, vector<8x512xf32> -> vector<8x512xf32>
    %c0_14 = arith.constant 0 : index
    %c0_15 = arith.constant 0 : index
    %19 = vector.load %arg7[%c0_14, %c0_15] : memref<1x512xf32, #tpu.memory_space<vmem>>, vector<1x512xf32>
    %20 = vector.broadcast %19 : vector<1x512xf32> to vector<8x512xf32>
    %21 = arith.addf %18, %20 : vector<8x512xf32>
    %cst_16 = arith.constant 0.000000e+00 : f32
    %22 = vector.broadcast %cst_16 : f32 to vector<8x512xf32>
    %23 = arith.subf %22, %21 : vector<8x512xf32>
    %24 = math.exp %23 : vector<8x512xf32>
    %cst_17 = arith.constant 1.000000e+00 : f32
    %25 = vector.broadcast %cst_17 : f32 to vector<8x512xf32>
    %26 = arith.addf %25, %24 : vector<8x512xf32>
    %27 = tpu.reciprocal %26 {approx = true} : vector<8x512xf32> -> vector<8x512xf32>
    %c0_18 = arith.constant 0 : index
    %c0_19 = arith.constant 0 : index
    %28 = vector.load %arg8[%c0_18, %c0_19] : memref<8x512xf32, #tpu.memory_space<vmem>>, vector<8x512xf32>
    tpu.vector_store %arg8[%c0_18, %c0_19], %27 {strides = array<i32>} : memref<8x512xf32, #tpu.memory_space<vmem>>, vector<8x512xf32>,
    return
  }
  func.func @transform_0(%arg0: i32, %arg1: i32) -> (i32, i32) {
    %c0_i32 = arith.constant 0 : i32
    %c0_i32_0 = arith.constant 0 : i32
    return %arg0, %c0_i32 : i32, i32
  }
  func.func @transform_1(%arg0: i32, %arg1: i32) -> (i32, i32) {
    %c0_i32 = arith.constant 0 : i32
    %c0_i32_0 = arith.constant 0 : i32
    %c0_i32_1 = arith.constant 0 : i32
    return %c0_i32, %c0_i32_0 : i32, i32
  }
  func.func @transform_2(%arg0: i32, %arg1: i32) -> (i32, i32) {
    %c0_i32 = arith.constant 0 : i32
    %c0_i32_0 = arith.constant 0 : i32
    %c0_i32_1 = arith.constant 0 : i32
    return %c0_i32, %c0_i32_0 : i32, i32
  }
  func.func @transform_3(%arg0: i32, %arg1: i32) -> (i32, i32) {
    %c0_i32 = arith.constant 0 : i32
    %c0_i32_0 = arith.constant 0 : i32
    return %c0_i32, %arg1 : i32, i32
  }
  func.func @transform_4(%arg0: i32, %arg1: i32) -> (i32, i32) {
    %c0_i32 = arith.constant 0 : i32
    %c0_i32_0 = arith.constant 0 : i32
    %c0_i32_1 = arith.constant 0 : i32
    return %c0_i32, %c0_i32_0 : i32, i32
  }
  func.func @transform_5(%arg0: i32, %arg1: i32) -> (i32, i32) {
    %c0_i32 = arith.constant 0 : i32
    %c0_i32_0 = arith.constant 0 : i32
    return %c0_i32, %arg1 : i32, i32
  }
  func.func @transform_6(%arg0: i32, %arg1: i32) -> (i32, i32) {
    %c0_i32 = arith.constant 0 : i32
    return %arg0, %arg1 : i32, i32
  }
}

</mosaic_0001>

<bundles_post_ra>
// kernel: simple_text2shape.1
= control target key start
LH: loop header
LB: loop body
LE: loop exit
PB: predicated region body
PF: predicated region fallthrough
CT: control target
= control target key end

     0   :  { %11 = vsyncpa [#allocation3], 0  ;;  %s708_s0 = inlined_call_operand.vmem [shape: bf16[8,32], index: 0, kind: input, shape index: {}]   ;;  %s709_s1 = inlined_call_operand.vmem [shape: bf16[32,64], index: 1, kind: input, shape index: {}]   ;;  %s710_s2 = inlined_call_operand.hbm [shape: bf16[64,64], index: 2, kind: input, shape index: {}]   ;;  %s711_s3 = inlined_call_operand.hbm [shape: bf16[64,512], index: 3, kind: input, shape index: {}]   ;;  %s712_s4 = inlined_call_operand.hbm [shape: f32[1,256], index: 4, kind: input, shape index: {}]   ;;  %s713_s5 = inlined_call_operand.vmem [shape: f32[1,512], index: 5, kind: input, shape index: {}]   ;;  %s714_s6 = inlined_call_operand.vmem [shape: f32[8,512], index: 6, kind: output, shape index: {}]  }
   0x1   :  { %12 = vsyncpa [#allocation5], 0  ;;  %s627_s21 = smov [#allocation4]  }
   0x2   :  { %s34_s22 = sshll.u32 %s627_s21, 4  ;;  %s35_s22 = int_to_ptr.vmem [resolvable:$true] %s34_s22 }
   0x3   :  { %s571_s23 = scalar_lea.vmem %s35_s22, 2048  ;;  %p576_p1 = scmp.lt.s32.totalorder %s35_s22, %s35_s22 }
   0x4   :  { %p572_p0 = scmp.ne.s32.totalorder %s35_s22, %s571_s23  ;;  %p577_p2 = scmp.lt.s32.totalorder %s571_s23, %s571_s23 }
   0x6   :  { %p578_p3 = por %p577_p2, %p576_p1 }
   0x8   :  { %p579_p4 = pnand %p578_p3, %p572_p0 }
   0xa   :  { %582 = shalt.err (!%p579_p4)
}
   0xb   :  { %s628_s24 = smov 256   ;;  %s629_s25 = smov 16  }
   0xc   :  { %40 = dma.hbm_to_vmem [thread:$0]  %s711_s3, 2048, %s35_s22, [#allocation5], %s628_s24, %s628_s24, %s629_s25  }
   0xd   :  { %s630_s28 = smov [#allocation2]  }
   0xe   :  { %s22_s29 = sshll.u32 %s630_s28, 4  ;;  %s23_s29 = int_to_ptr.vmem [resolvable:$true] %s22_s29 }
   0xf   :  { %s591_s30 = scalar_lea.vmem %s23_s29, 512  ;;  %p596_p6 = scmp.lt.s32.totalorder %s23_s29, %s23_s29 }
  0x10   :  { %p592_p5 = scmp.ne.s32.totalorder %s23_s29, %s591_s30  ;;  %p597_p7 = scmp.lt.s32.totalorder %s591_s30, %s591_s30 }
  0x12   :  { %p598_p8 = por %p597_p7, %p596_p6 }
  0x14   :  { %p599_p9 = pnand %p598_p8, %p592_p5 }
  0x16   :  { %602 = shalt.err (!%p599_p9)
}
  0x17   :  { %s631_s7 = smov 64   ;;  %s632_s8 = smov 4  }
  0x18   :  { %28 = dma.hbm_to_vmem [thread:$0]  %s710_s2, 512, %s23_s29, [#allocation3], %s631_s7, %s631_s7, %s632_s8  }
  0x19   :  { %s633_s11 = smov [#allocation6]  }
  0x1a   :  { %s47_s12 = sshll.u32 %s633_s11, 4  ;;  %s48_s12 = int_to_ptr.vmem [resolvable:$true] %s47_s12 }
  0x1b   :  { %s611_s3 = scalar_lea.vmem %s48_s12, 32  ;;  %p616_p11 = scmp.lt.s32.totalorder %s48_s12, %s48_s12 }
  0x1c   :  { %p612_p10 = scmp.ne.s32.totalorder %s48_s12, %s611_s3  ;;  %p617_p12 = scmp.lt.s32.totalorder %s611_s3, %s611_s3 }
  0x1e   :  { %p618_p13 = por %p617_p12, %p616_p11 }
  0x20   :  { %p619_p0 = pnand %p618_p13, %p612_p10 }
  0x22   :  { %622 = shalt.err (!%p619_p0)
}
  0x23   :  { %50 = dma.hbm_to_vmem [thread:$0]  %s712_s4, 32, %s48_s12, [#allocation5]  }
  0x24   :  { %623 = dma.done.wait [#allocation3], 512  }
  0x25   :  { %624 = vsyncadd [#allocation3], 4294966784 }
  0x26   :  { %625 = dma.done.wait [#allocation5], 2080  }
  0x27   :  { %626 = vsyncadd [#allocation5], 4294965216  ;;  %v634_v0 = vmov 0.0   ;;  %vm635_vm0 = vmmov 0   ;;  %v517_v1 = vld [vmem:[%s709_s1 + $0x8] sm:$0xff]   ;;  %v518_v2 = vld [vmem:[%s709_s1] sm:$0xff]   ;;  %v236_v41 = vlaneseq }
  0x28   :  { %487 = vmatprep.subr.bf16.mxu0 %v634_v0  ;;  %491 = vmatprep.mubr.msk.bf16.mxu0 %vm635_vm0, %v634_v0  ;;  %v519_v3 = vld [vmem:[#allocation2 + $0x18] sm:$0xff]   ;;  %v65_v4 = vld [vmem:[%s708_s0] sm:$0xf]  ;;  %vm88_vm1 = vcmask 261120   ;;  %v521_v6 = vld [vmem:[#allocation2 + $0x8] sm:$0xff]   ;;  %vm172_vm2 = vcmask 523264  }
  0x29   :  { %495 = vmatprep.subr.bf16.mxu1 %v634_v0  ;;  %503 = vmatprep.mubr.msk.bf16.mxu1 %vm635_vm0, %v634_v0  ;;  %v520_v5 = vld [vmem:[#allocation2 + $0x10] sm:$0xff]   ;;  %v522_v7 = vld [vmem:[#allocation2] sm:$0xff]   ;;  %v528_v10 = vld [vmem:[#allocation4 + $0x6c] ss:$16 sps:$4 sm:$0xff]   ;;  %v636_v32 = vmov 0   ;;  %v237_v42 = vshrl.u32 %v236_v41, 7 }
  0x2a   :  { %488 = vmatpush3.bf16.msra.mxu0 %v517_v1  ;;  %496 = vmatpush3.bf16.msra.mxu1 %v519_v3  ;;  %v523_v8 = vld [vmem:[#allocation4 + $0x60] ss:$16 sps:$4 sm:$0xff]   ;;  %v525_v9 = vld [vmem:[#allocation4 + $0x64] ss:$16 sps:$4 sm:$0xff]   ;;  %v526_v21 = vld [vmem:[#allocation4 + $0x68] ss:$16 sps:$4 sm:$0xff]  }
  0x2b   :  { %489 = vmatprep.subr.bf16.mxu0 %v634_v0  ;;  %497 = vmatprep.subr.bf16.mxu1 %v634_v0  ;;  %v531_v11 = vld [vmem:[#allocation4 + $0x44] ss:$16 sps:$4 sm:$0xff]   ;;  %v529_v12 = vld [vmem:[#allocation4 + $0x40] ss:$16 sps:$4 sm:$0xff]   ;;  %v534_v23 = vld [vmem:[#allocation4 + $0x4c] ss:$16 sps:$4 sm:$0xff]  }
  0x2c   :  { %v537_v13 = vld [vmem:[#allocation4 + $0x24] ss:$16 sps:$4 sm:$0xff]   ;;  %v535_v14 = vld [vmem:[#allocation4 + $0x20] ss:$16 sps:$4 sm:$0xff]   ;;  %v532_v25 = vld [vmem:[#allocation4 + $0x48] ss:$16 sps:$4 sm:$0xff]  }
  0x2d   :  { %v451_v15 = vld [vmem:[#allocation6] ss:$0 sm:$0xff]  ;;  %v540_v26 = vld [vmem:[#allocation4 + $0x2c] ss:$16 sps:$4 sm:$0xff]   ;;  %v538_v27 = vld [vmem:[#allocation4 + $0x28] ss:$16 sps:$4 sm:$0xff]  }
  0x2e   :  { %490 = vmatpush3.bf16.msra.mxu0 %v518_v2  ;;  %498 = vmatpush3.bf16.msra.mxu1 %v520_v5  ;;  %v543_v28 = vld [vmem:[#allocation4 + $0x4] ss:$16 sps:$4 sm:$0xff]   ;;  %v546_v29 = vld [vmem:[#allocation4 + $0xc] ss:$16 sps:$4 sm:$0xff]   ;;  %v541_v30 = vld [vmem:[#allocation4] ss:$16 sps:$4 sm:$0xff]  }
  0x2f   :  { %499 = vmatprep.subr.bf16.mxu1 %v634_v0  ;;  %347 = vmatprep.subr.bf16.mxu0 %v525_v9  ;;  %v544_v31 = vld [vmem:[#allocation4 + $0x8] ss:$16 sps:$4 sm:$0xff]   ;;  %v455_v33 = vld [vmem:[#allocation6 + $0x1] ss:$0 sm:$0xff]  ;;  %v238_v43 = vsub.s32 0, %v237_v42  ;;  %v246_v44 = vsub.s32 2, %v237_v42 }
  0x30   :  { %v234_v45 = vld [vmem:[%s713_s5] sm:$0xf]  ;;  %v242_v46 = vsub.s32 1, %v237_v42  ;;  %v250_v47 = vsub.s32 3, %v237_v42 }
  0x31   :  { %492 = vmatmul.mubr.msk.bf16.vlgmr.msra.gmra.mxu0 %vm88_vm1, %v65_v4  ;;  %v239_v48 = vrot.slane %v234_v45, %v238_v43  ;;  %v247_v49 = vrot.slane %v234_v45, %v246_v44 }
  0x32   :  { %500 = vmatpush3.bf16.msra.mxu1 %v521_v6  ;;  %348 = vmatpush1.bf16.msra.mxu0 %v523_v8  ;;  %v243_v50 = vrot.slane %v234_v45, %v242_v46  ;;  %v251_v51 = vrot.slane %v234_v45, %v250_v47 }
  0x33   :  { %501 = vmatprep.subr.bf16.mxu1 %v634_v0  ;;  %349 = vmatprep.subr.bf16.mxu0 %v531_v11 }
  0x34   :  { %371 = vmatprep.mubr.bf16.mxu0 %v636_v32 }
  0x36   :  { %502 = vmatpush3.bf16.msra.mxu1 %v522_v7  ;;  %350 = vmatpush1.bf16.msra.mxu0 %v529_v12 }
  0x37   :  { %388 = vmatprep.subr.bf16.mxu1 %v528_v10  ;;  %351 = vmatprep.subr.bf16.mxu0 %v537_v13 }
  0x3a   :  { %352 = vmatpush1.bf16.msra.mxu0 %v535_v14 }
  0x3b   :  { %353 = vmatprep.subr.bf16.mxu0 %v543_v28 }
  0x3e   :  { %354 = vmatpush1.bf16.msra.mxu0 %v541_v30 }
  0xf1   :  { %v126_v16 = vpop.f32.mrf.mxu0 }
  0xf2   :  { %v127_v17 = vadd.f32 %v451_v15, %v126_v16 }
  0xf3   :  { %v493_v18 = vpop.f32.mrf.mxu0 }
  0xf4   :  { %v132_v19 = vmax.f32 %v127_v17, 0.0 }
  0xf5   :  { %v129_v20 = vpop.f32.mrf.mxu0 }
  0xf6   :  { %v133_v22 = vpack.c.bf16 %v132_v19, %v132_v19 }
  0xf7   :  { %v494_v24 = vpop.f32.mrf.mxu0 }
  0xf8   :  { %504 = vmatmul.mubr.msk.bf16.vlgmr.msra.gmra.mxu1 %vm172_vm2, %v133_v22 }
  0xf9   :  { %389 = vmatpush1.bf16.msra.mxu1 %v526_v21  ;;  %412 = vmatprep.mubr.bf16.mxu1 %v636_v32 }
  0xfa   :  { %390 = vmatprep.subr.bf16.mxu1 %v534_v23 }
  0xfd   :  { %391 = vmatpush1.bf16.msra.mxu1 %v532_v25 }
  0xfe   :  { %392 = vmatprep.subr.bf16.mxu1 %v540_v26 }
 0x101   :  { %393 = vmatpush1.bf16.msra.mxu1 %v538_v27 }
 0x102   :  { %394 = vmatprep.subr.bf16.mxu1 %v546_v29 }
 0x105   :  { %395 = vmatpush1.bf16.msra.mxu1 %v544_v31 }
 0x1b8   :  { %v210_v34 = vpop.f32.mrf.mxu1 }
 0x1b9   :  { %v211_v35 = vadd.f32 %v455_v33, %v210_v34 }
 0x1ba   :  { %v505_v36 = vpop.f32.mrf.mxu1 }
 0x1bb   :  { %v216_v37 = vmax.f32 %v211_v35, 0.0 }
 0x1bc   :  { %v213_v38 = vpop.f32.mrf.mxu1 }
 0x1bd   :  { %v217_v39 = vpack.c.bf16 %v216_v37, %v216_v37 }
 0x1be   :  { %v506_v40 = vpop.f32.mrf.mxu1 }
 0x1bf   :  { %477 = vmatmul.mubr.msk.bf16.vlgmr.msra.gmra.mxu0 %vm172_vm2, %v217_v39  ;;  %478 = vmatmul.mubr.msk.bf16.vlgmr.msra.gmra.mxu1 %vm172_vm2, %v217_v39 }
 0x27f   :  { %v373_v52 = vpop.f32.mrf.mxu0  ;;  %v414_v53 = vpop.f32.mrf.mxu1 }
 0x280   :  { %v374_v54 = vadd.f32 %v373_v52, %v239_v48  ;;  %v415_v55 = vadd.f32 %v414_v53, %v247_v49 }
 0x281   :  { %v375_v56 = vpop.f32.mrf.mxu0  ;;  %v416_v57 = vpop.f32.mrf.mxu1 }
 0x282   :  { %v421_v58 = vsub.f32 0.0, %v374_v54  ;;  %v423_v59 = vsub.f32 0.0, %v415_v55  ;;  %v376_v60 = vadd.f32 %v375_v56, %v243_v50  ;;  %v417_v61 = vadd.f32 %v416_v57, %v251_v51 }
 0x283   :  { %v377_v62 = vpop.f32.mrf.mxu0  ;;  %v418_v63 = vpop.f32.mrf.mxu1 }
 0x284   :  { %v425_v0 = vmul.f32 1.442695, %v421_v58  ;;  %v429_v1 = vmul.f32 1.442695, %v423_v59  ;;  %v422_v2 = vsub.f32 0.0, %v376_v60  ;;  %v424_v3 = vsub.f32 0.0, %v417_v61 }
 0x285   :  { %v378_v4 = vpop.f32.mrf.mxu0  ;;  %v419_v5 = vpop.f32.mrf.mxu1 }
 0x286   :  { %547 = vpow2.f32 %v425_v0  ;;  %v427_v6 = vmul.f32 1.442695, %v422_v2  ;;  %v431_v7 = vmul.f32 1.442695, %v424_v3 }
 0x287   :  { %549 = vpow2.f32 %v429_v1 }
 0x288   :  { %551 = vpow2.f32 %v427_v6 }
 0x289   :  { %553 = vpow2.f32 %v431_v7 }
 0x293   :  { %v548_v8 = vpop.eup %547 }
 0x294   :  { %v550_v9 = vpop.eup %549  ;;  %v433_v10 = vadd.f32 1.0, %v548_v8 }
 0x295   :  { %v552_v11 = vpop.eup %551  ;;  %v435_v12 = vadd.f32 1.0, %v550_v9 }
 0x296   :  { %v554_v13 = vpop.eup %553  ;;  %555 = vrcp.f32 %v433_v10  ;;  %v434_v14 = vadd.f32 1.0, %v552_v11 }
 0x297   :  { %557 = vrcp.f32 %v435_v12  ;;  %v436_v15 = vadd.f32 1.0, %v554_v13 }
 0x298   :  { %559 = vrcp.f32 %v434_v14 }
 0x299   :  { %561 = vrcp.f32 %v436_v15 }
 0x2a3   :  { %v556_v16 = vpop.eup %555 }
 0x2a4   :  { %v558_v17 = vpop.eup %557  ;;  %441 = vst [vmem:[%s714_s6] sm:$0xff] %v556_v16 }
 0x2a5   :  { %v560_v18 = vpop.eup %559  ;;  %443 = vst [vmem:[%s714_s6 + $0x10] sm:$0xff] %v558_v17 }
 0x2a6   :  { %v562_v19 = vpop.eup %561  ;;  %442 = vst [vmem:[%s714_s6 + $0x8] sm:$0xff] %v560_v18 }
 0x2a7   :  { %444 = vst [vmem:[%s714_s6 + $0x18] sm:$0xff] %v562_v19 }
 0x2a8   :  { %449 = vsyncpa [#allocation3], 1 }
 0x2a9   :  { %450 = vsyncpa [#allocation5], 1 }

</bundles_post_ra>
